<compile_context>
chip_gen: v6e
topology: v6e:2x2x1
jax: 0.10.0
libtpu: 0.0.40
codegen_flags: <defaults>
</compile_context>

<pallas_src>
import jax
import jax.numpy as jnp
from jax.experimental import pallas as pl
from jax.experimental.pallas import tpu as pltpu

# MNIST-style constants implied by the module.
IMAGE_HEIGHT = 28
IMAGE_WIDTH = 28
NUM_CHANNELS = 1
NUM_CLASSES = 10

IN_FEATURES = IMAGE_HEIGHT * IMAGE_WIDTH * NUM_CHANNELS  # 784
HIDDEN1 = 128
HIDDEN2 = 64
HIDDEN2_PAD = 128  # lane-dense padded hidden-2 dimension
OUT_PAD = 128      # lane-dense padded class dimension (>= NUM_CLASSES)


def _round_up(x, m):
    return ((x + m - 1) // m) * m


def _mlp_kernel(x_ref, w1_ref, b1_ref, w2_ref, b2_ref, w3_ref, b3_ref, o_ref):
    # One batch tile fully resident in VMEM.  The three matmuls hit the MXU
    # (bf16 inputs, f32 accumulation); ReLU / bias adds ride spare VPU slots.
    x = x_ref[...]                                                   # (TB, 784) bf16

    h1 = jnp.dot(x, w1_ref[...], preferred_element_type=jnp.float32)
    h1 = jnp.maximum(h1 + b1_ref[...], 0.0)                          # (TB, 128) f32
    # Dropout(0.1): identity at inference.

    h2 = jnp.dot(h1.astype(jnp.bfloat16), w2_ref[...],
                 preferred_element_type=jnp.float32)
    h2 = jnp.maximum(h2 + b2_ref[...], 0.0)                          # (TB, 128) f32
    # Dropout(0.1): identity at inference.  (cols 64:128 are exactly zero)

    h3 = jnp.dot(h2.astype(jnp.bfloat16), w3_ref[...],
                 preferred_element_type=jnp.float32)
    h3 = h3 + b3_ref[...]                                            # (TB, 128) f32

    o_ref[...] = h3.astype(o_ref.dtype)                              # lane-dense bf16 store


def mnist_net2_forward(x_nchw, params, *, batch_tile=None):
    """Forward pass of MNISTNet2.

    x_nchw: (B, C, H, W) float32, NCHW like PyTorch.
    params: dict with w1 (784,128), b1 (1,128), w2 (128,64), b2 (1,64),
            w3 (64,10), b3 (1,10).  (f32; cast to bf16 internally.)
    Returns logits of shape (B, NUM_CLASSES), float32.
    """
    B = x_nchw.shape[0]
    x_flat = x_nchw.reshape(B, -1)                    # nn.Flatten()
    assert x_flat.shape[1] == IN_FEATURES

    # --- batch tiling (multiple of 8; ~2048 rows keeps per-step overhead low
    #     while staying ~12 MB of VMEM -> safe on v5e/v6e/v7x) ---
    if batch_tile is None:
        batch_tile = min(2048, _round_up(B, 8))
    batch_tile = _round_up(batch_tile, 8)
    B_padded = _round_up(B, batch_tile)
    if B_padded != B:
        x_flat = jnp.pad(x_flat, ((0, B_padded - B), (0, 0)))
    grid = (B_padded // batch_tile,)

    # --- cast the bandwidth-dominant operands to bf16; biases stay f32 and
    #     are added post-accumulation ---
    x_bf16 = x_flat.astype(jnp.bfloat16)
    w1 = params["w1"].astype(jnp.bfloat16)
    b1 = params["b1"].astype(jnp.float32)

    # --- lane-dense hidden-2: pad 64 -> 128 (zero cols of w2/b2, zero rows of w3) ---
    w2 = jnp.zeros((HIDDEN1, HIDDEN2_PAD), jnp.bfloat16)
    w2 = w2.at[:, :HIDDEN2].set(params["w2"].astype(jnp.bfloat16))
    b2 = jnp.zeros((1, HIDDEN2_PAD), jnp.float32)
    b2 = b2.at[:, :HIDDEN2].set(params["b2"].astype(jnp.float32))

    # --- lane-dense output: pad last layer to 128 output columns ---
    w3 = jnp.zeros((HIDDEN2_PAD, OUT_PAD), jnp.bfloat16)
    w3 = w3.at[:HIDDEN2, :NUM_CLASSES].set(params["w3"].astype(jnp.bfloat16))
    b3 = jnp.zeros((1, OUT_PAD), jnp.float32)
    b3 = b3.at[:, :NUM_CLASSES].set(params["b3"].astype(jnp.float32))

    # Weights/biases are small; constant index_map keeps them resident.
    full = lambda shape: pl.BlockSpec(shape, lambda i: (0, 0))

    out_padded = pl.pallas_call(
        _mlp_kernel,
        out_shape=jax.ShapeDtypeStruct((B_padded, OUT_PAD), jnp.bfloat16),
        grid_spec=pltpu.PrefetchScalarGridSpec(
            num_scalar_prefetch=0,
            grid=grid,
            in_specs=[
                pl.BlockSpec((batch_tile, IN_FEATURES), lambda i: (i, 0)),  # x
                full((IN_FEATURES, HIDDEN1)),                               # w1
                full((1, HIDDEN1)),                                         # b1
                full((HIDDEN1, HIDDEN2_PAD)),                               # w2 (padded)
                full((1, HIDDEN2_PAD)),                                     # b2 (padded)
                full((HIDDEN2_PAD, OUT_PAD)),                               # w3 (padded)
                full((1, OUT_PAD)),                                         # b3 (padded)
            ],
            out_specs=pl.BlockSpec((batch_tile, OUT_PAD), lambda i: (i, 0)),
        ),
        compiler_params=pltpu.CompilerParams(
            dimension_semantics=("parallel",),   # shards the batch grid across
                                                 # both TCs on v7x; no-op elsewhere
            vmem_limit_bytes=48 << 20,           # below v7x's 64 MiB physical VMEM
        ),
    )(x_bf16, w1, b1, w2, b2, w3, b3)

    # Drop batch padding and the padded class columns outside the kernel;
    # return f32 logits like the torch module.
    return out_padded[:B, :NUM_CLASSES].astype(jnp.float32)


def init_params(key):
    """Deterministic parameter init (Kaiming-uniform-like, matching shapes of
    the torch Linear layers; stored transposed as (in, out))."""
    k1, k2, k3, k4, k5, k6 = jax.random.split(key, 6)

    def lin(kw, kb, fan_in, fan_out):
        bound = 1.0 / jnp.sqrt(fan_in)
        w = jax.random.uniform(kw, (fan_in, fan_out), jnp.float32, -bound, bound)
        b = jax.random.uniform(kb, (1, fan_out), jnp.float32, -bound, bound)
        return w, b

    w1, b1 = lin(k1, k2, IN_FEATURES, HIDDEN1)
    w2, b2 = lin(k3, k4, HIDDEN1, HIDDEN2)
    w3, b3 = lin(k5, k6, HIDDEN2, NUM_CLASSES)
    return {"w1": w1, "b1": b1, "w2": w2, "b2": b2, "w3": w3, "b3": b3}


if __name__ == "__main__":
    key = jax.random.PRNGKey(0)
    k_x, k_p = jax.random.split(key)

    # Small deterministic input batch, NCHW like PyTorch.
    B = 8
    x = jax.random.normal(
        k_x, (B, NUM_CHANNELS, IMAGE_HEIGHT, IMAGE_WIDTH), dtype=jnp.float32
    )
    params = init_params(k_p)

    logits = mnist_net2_forward(x, params)
    jax.block_until_ready(logits)

    # Lightweight correctness check against a plain-JAX f32 reference.
    # The kernel computes in bf16 (f32 accumulation) and stores bf16, so use a
    # bf16-level tolerance against the full-precision reference.
    x_flat = x.reshape(B, -1)
    h1 = jnp.maximum(x_flat @ params["w1"] + params["b1"], 0.0)
    h2 = jnp.maximum(h1 @ params["w2"] + params["b2"], 0.0)
    ref = h2 @ params["w3"] + params["b3"]
    assert logits.shape == (B, NUM_CLASSES)
    assert logits.dtype == jnp.float32
    assert jnp.allclose(logits, ref, atol=5e-2, rtol=5e-2), (
        float(jnp.max(jnp.abs(logits - ref))))

    print("KERNEL_OK")
</pallas_src>

<mosaic_0001>
module attributes {stable_mosaic.version = 11 : i64} {
  func.func @_mlp_kernel(%arg0: i32, %arg1: memref<8x784xbf16, #tpu.memory_space<vmem>>, %arg2: memref<784x128xbf16, #tpu.memory_space<vmem>>, %arg3: memref<1x128xf32, #tpu.memory_space<vmem>>, %arg4: memref<128x128xbf16, #tpu.memory_space<vmem>>, %arg5: memref<1x128xf32, #tpu.memory_space<vmem>>, %arg6: memref<128x128xbf16, #tpu.memory_space<vmem>>, %arg7: memref<1x128xf32, #tpu.memory_space<vmem>>, %arg8: memref<8x128xbf16, #tpu.memory_space<vmem>>) attributes {dimension_semantics = [#tpu.dimension_semantics<parallel>], iteration_bounds = array<i64: 1>, scalar_prefetch = 0 : i64, scratch_operands = 0 : i64, tpu.core_type = #tpu.core_type<tc>, window_params = [{transform_indices = @transform_0, window_bounds = array<i64: 8, 784>}, {pipeline_mode = #tpu.pipeline_mode<synchronous>, transform_indices = @transform_1, window_bounds = array<i64: 784, 128>}, {pipeline_mode = #tpu.pipeline_mode<synchronous>, transform_indices = @transform_2, window_bounds = array<i64: 1, 128>}, {pipeline_mode = #tpu.pipeline_mode<synchronous>, transform_indices = @transform_3, window_bounds = array<i64: 128, 128>}, {pipeline_mode = #tpu.pipeline_mode<synchronous>, transform_indices = @transform_4, window_bounds = array<i64: 1, 128>}, {pipeline_mode = #tpu.pipeline_mode<synchronous>, transform_indices = @transform_5, window_bounds = array<i64: 128, 128>}, {pipeline_mode = #tpu.pipeline_mode<synchronous>, transform_indices = @transform_6, window_bounds = array<i64: 1, 128>}, {transform_indices = @transform_7, window_bounds = array<i64: 8, 128>}]} {
    %c0 = arith.constant 0 : index
    %c0_0 = arith.constant 0 : index
    %0 = vector.load %arg1[%c0, %c0_0] : memref<8x784xbf16, #tpu.memory_space<vmem>>, vector<8x784xbf16>
    %c0_1 = arith.constant 0 : index
    %c0_2 = arith.constant 0 : index
    %1 = vector.load %arg2[%c0_1, %c0_2] : memref<784x128xbf16, #tpu.memory_space<vmem>>, vector<784x128xbf16>
    %cst = arith.constant dense<0.000000e+00> : vector<8x128xf32>
    %2 = tpu.matmul %0, %1, %cst {dimension_numbers = #tpu.dot_dimension_numbers<[1], [0], [0], [1], [0, 0, 1, 1], [], []>} : vector<8x784xbf16>, vector<784x128xbf16>, vector<8x128xf32> -> vector<8x128xf32>
    %c0_3 = arith.constant 0 : index
    %c0_4 = arith.constant 0 : index
    %3 = vector.load %arg3[%c0_3, %c0_4] : memref<1x128xf32, #tpu.memory_space<vmem>>, vector<1x128xf32>
    %4 = vector.broadcast %3 : vector<1x128xf32> to vector<8x128xf32>
    %5 = arith.addf %2, %4 : vector<8x128xf32>
    %cst_5 = arith.constant 0.000000e+00 : f32
    %6 = vector.broadcast %cst_5 : f32 to vector<8x128xf32>
    %7 = arith.maximumf %5, %6 : vector<8x128xf32>
    %8 = arith.truncf %7 : vector<8x128xf32> to vector<8x128xbf16>
    %c0_6 = arith.constant 0 : index
    %c0_7 = arith.constant 0 : index
    %9 = vector.load %arg4[%c0_6, %c0_7] : memref<128x128xbf16, #tpu.memory_space<vmem>>, vector<128x128xbf16>
    %cst_8 = arith.constant dense<0.000000e+00> : vector<8x128xf32>
    %10 = tpu.matmul %8, %9, %cst_8 {dimension_numbers = #tpu.dot_dimension_numbers<[1], [0], [0], [1], [0, 0, 1, 1], [], []>} : vector<8x128xbf16>, vector<128x128xbf16>, vector<8x128xf32> -> vector<8x128xf32>
    %c0_9 = arith.constant 0 : index
    %c0_10 = arith.constant 0 : index
    %11 = vector.load %arg5[%c0_9, %c0_10] : memref<1x128xf32, #tpu.memory_space<vmem>>, vector<1x128xf32>
    %12 = vector.broadcast %11 : vector<1x128xf32> to vector<8x128xf32>
    %13 = arith.addf %10, %12 : vector<8x128xf32>
    %cst_11 = arith.constant 0.000000e+00 : f32
    %14 = vector.broadcast %cst_11 : f32 to vector<8x128xf32>
    %15 = arith.maximumf %13, %14 : vector<8x128xf32>
    %16 = arith.truncf %15 : vector<8x128xf32> to vector<8x128xbf16>
    %c0_12 = arith.constant 0 : index
    %c0_13 = arith.constant 0 : index
    %17 = vector.load %arg6[%c0_12, %c0_13] : memref<128x128xbf16, #tpu.memory_space<vmem>>, vector<128x128xbf16>
    %cst_14 = arith.constant dense<0.000000e+00> : vector<8x128xf32>
    %18 = tpu.matmul %16, %17, %cst_14 {dimension_numbers = #tpu.dot_dimension_numbers<[1], [0], [0], [1], [0, 0, 1, 1], [], []>} : vector<8x128xbf16>, vector<128x128xbf16>, vector<8x128xf32> -> vector<8x128xf32>
    %c0_15 = arith.constant 0 : index
    %c0_16 = arith.constant 0 : index
    %19 = vector.load %arg7[%c0_15, %c0_16] : memref<1x128xf32, #tpu.memory_space<vmem>>, vector<1x128xf32>
    %20 = vector.broadcast %19 : vector<1x128xf32> to vector<8x128xf32>
    %21 = arith.addf %18, %20 : vector<8x128xf32>
    %22 = arith.truncf %21 : vector<8x128xf32> to vector<8x128xbf16>
    %c0_17 = arith.constant 0 : index
    %c0_18 = arith.constant 0 : index
    %23 = vector.load %arg8[%c0_17, %c0_18] : memref<8x128xbf16, #tpu.memory_space<vmem>>, vector<8x128xbf16>
    tpu.vector_store %arg8[%c0_17, %c0_18], %22 {strides = array<i32>} : memref<8x128xbf16, #tpu.memory_space<vmem>>, vector<8x128xbf16>,
    return
  }
  func.func @transform_0(%arg0: i32) -> (i32, i32) {
    %c0_i32 = arith.constant 0 : i32
    %c0_i32_0 = arith.constant 0 : i32
    return %arg0, %c0_i32 : i32, i32
  }
  func.func @transform_1(%arg0: i32) -> (i32, i32) {
    %c0_i32 = arith.constant 0 : i32
    %c0_i32_0 = arith.constant 0 : i32
    %c0_i32_1 = arith.constant 0 : i32
    return %c0_i32, %c0_i32_0 : i32, i32
  }
  func.func @transform_2(%arg0: i32) -> (i32, i32) {
    %c0_i32 = arith.constant 0 : i32
    %c0_i32_0 = arith.constant 0 : i32
    %c0_i32_1 = arith.constant 0 : i32
    return %c0_i32, %c0_i32_0 : i32, i32
  }
  func.func @transform_3(%arg0: i32) -> (i32, i32) {
    %c0_i32 = arith.constant 0 : i32
    %c0_i32_0 = arith.constant 0 : i32
    %c0_i32_1 = arith.constant 0 : i32
    return %c0_i32, %c0_i32_0 : i32, i32
  }
  func.func @transform_4(%arg0: i32) -> (i32, i32) {
    %c0_i32 = arith.constant 0 : i32
    %c0_i32_0 = arith.constant 0 : i32
    %c0_i32_1 = arith.constant 0 : i32
    return %c0_i32, %c0_i32_0 : i32, i32
  }
  func.func @transform_5(%arg0: i32) -> (i32, i32) {
    %c0_i32 = arith.constant 0 : i32
    %c0_i32_0 = arith.constant 0 : i32
    %c0_i32_1 = arith.constant 0 : i32
    return %c0_i32, %c0_i32_0 : i32, i32
  }
  func.func @transform_6(%arg0: i32) -> (i32, i32) {
    %c0_i32 = arith.constant 0 : i32
    %c0_i32_0 = arith.constant 0 : i32
    %c0_i32_1 = arith.constant 0 : i32
    return %c0_i32, %c0_i32_0 : i32, i32
  }
  func.func @transform_7(%arg0: i32) -> (i32, i32) {
    %c0_i32 = arith.constant 0 : i32
    %c0_i32_0 = arith.constant 0 : i32
    return %arg0, %c0_i32 : i32, i32
  }
}

</mosaic_0001>

<bundles_post_ra>
// kernel: tpu_custom_call.1
= control target key start
LH: loop header
LB: loop body
LE: loop exit
PB: predicated region body
PF: predicated region fallthrough
CT: control target
= control target key end

     0   :  { %12 = vsyncpa [#allocation3], 0  ;;  %s1419_s0 = inlined_call_operand.hbm [shape: bf16[8,784], index: 0, kind: input, shape index: {}]   ;;  %s1420_s1 = inlined_call_operand.hbm [shape: bf16[784,128], index: 1, kind: input, shape index: {}]   ;;  %s1421_s2 = inlined_call_operand.vmem [shape: f32[1,128], index: 2, kind: input, shape index: {}]   ;;  %s1422_s3 = inlined_call_operand.hbm [shape: bf16[128,128], index: 3, kind: input, shape index: {}]   ;;  %s1423_s4 = inlined_call_operand.vmem [shape: f32[1,128], index: 4, kind: input, shape index: {}]   ;;  %s1424_s5 = inlined_call_operand.hbm [shape: bf16[128,128], index: 5, kind: input, shape index: {}]   ;;  %s1425_s6 = inlined_call_operand.vmem [shape: f32[1,128], index: 6, kind: input, shape index: {}]   ;;  %s1426_s7 = inlined_call_operand.hbm [shape: bf16[8,128], index: 7, kind: output, shape index: {}]  }
   0x1   :  { %13 = vsyncpa [#allocation6], 0 }
   0x2   :  { %14 = vsyncpa [#allocation9], 0 }
   0x3   :  { %15 = vsyncpa [#allocation4], 0  ;;  %s1314_s24 = smov [#allocation5]  }
   0x4   :  { %s31_s25 = sshll.u32 %s1314_s24, 4  ;;  %s32_s25 = int_to_ptr.vmem [resolvable:$true] %s31_s25 }
   0x5   :  { %s1214_s26 = scalar_lea.vmem %s32_s25, 6272  ;;  %p1219_p1 = scmp.lt.s32.totalorder %s32_s25, %s32_s25 }
   0x6   :  { %p1215_p0 = scmp.ne.s32.totalorder %s32_s25, %s1214_s26  ;;  %p1220_p2 = scmp.lt.s32.totalorder %s1214_s26, %s1214_s26 }
   0x8   :  { %p1221_p3 = por %p1220_p2, %p1219_p1 }
   0xa   :  { %p1222_p4 = pnand %p1221_p3, %p1215_p0 }
   0xc   :  { %1225 = shalt.err (!%p1222_p4)
}
   0xd   :  { %s1315_s27 = smov 64   ;;  %s1316_s28 = smov 4  }
   0xe   :  { %37 = dma.hbm_to_vmem [thread:$0]  %s1420_s1, 6272, %s32_s25, [#allocation6], %s1315_s27, %s1315_s27, %s1316_s28  }
   0xf   :  { %s1317_s8 = smov [#allocation2]   ;;  %s1318_s10 = smov [#allocation7]  }
  0x10   :  { %s22_s9 = sshll.u32 %s1317_s8, 4  ;;  %s45_s11 = sshll.u32 %s1318_s10, 4  ;;  %s23_s9 = int_to_ptr.vmem [resolvable:$true] %s22_s9  ;;  %s46_s11 = int_to_ptr.vmem [resolvable:$true] %s45_s11 }
  0x11   :  { %s1234_s12 = scalar_lea.vmem %s23_s9, 448  ;;  %p1239_p6 = scmp.lt.s32.totalorder %s23_s9, %s23_s9 }
  0x12   :  { %p1235_p5 = scmp.ne.s32.totalorder %s23_s9, %s1234_s12  ;;  %p1240_p7 = scmp.lt.s32.totalorder %s1234_s12, %s1234_s12 }
  0x14   :  { %p1241_p8 = por %p1240_p7, %p1239_p6 }
  0x16   :  { %p1242_p9 = pnand %p1241_p8, %p1235_p5 }
  0x18   :  { %1245 = shalt.err (!%p1242_p9)
}
  0x19   :  { %25 = dma.hbm_to_vmem [thread:$0]  %s1419_s0, 448, %s23_s9, [#allocation3]  }
  0x1a   :  { %s1254_s15 = scalar_lea.vmem %s46_s11, 1024  ;;  %p1259_p11 = scmp.lt.s32.totalorder %s46_s11, %s46_s11 }
  0x1b   :  { %p1255_p10 = scmp.ne.s32.totalorder %s46_s11, %s1254_s15  ;;  %p1260_p12 = scmp.lt.s32.totalorder %s1254_s15, %s1254_s15 }
  0x1d   :  { %p1261_p13 = por %p1260_p12, %p1259_p11 }
  0x1f   :  { %p1262_p0 = pnand %p1261_p13, %p1255_p10 }
  0x21   :  { %1265 = shalt.err (!%p1262_p0)
}
  0x22   :  { %51 = dma.hbm_to_vmem [thread:$0]  %s1422_s3, 1024, %s46_s11, [#allocation6], %s1315_s27, %s1315_s27, %s1316_s28  }
  0x23   :  { %s1319_s17 = smov [#allocation8]  }
  0x24   :  { %s59_s18 = sshll.u32 %s1319_s17, 4  ;;  %s60_s18 = int_to_ptr.vmem [resolvable:$true] %s59_s18 }
  0x25   :  { %s1274_s19 = scalar_lea.vmem %s60_s18, 1024  ;;  %p1279_p2 = scmp.lt.s32.totalorder %s60_s18, %s60_s18 }
  0x26   :  { %p1275_p1 = scmp.ne.s32.totalorder %s60_s18, %s1274_s19  ;;  %p1280_p3 = scmp.lt.s32.totalorder %s1274_s19, %s1274_s19 }
  0x28   :  { %p1281_p4 = por %p1280_p3, %p1279_p2 }
  0x2a   :  { %p1282_p5 = pnand %p1281_p4, %p1275_p1 }
  0x2c   :  { %1285 = shalt.err (!%p1282_p5)
}
  0x2d   :  { %65 = dma.hbm_to_vmem [thread:$0]  %s1424_s5, 1024, %s60_s18, [#allocation9], %s1315_s27, %s1315_s27, %s1316_s28  }
  0x2e   :  { %1306 = dma.done.wait [#allocation3], 448  }
  0x2f   :  { %1307 = vsyncadd [#allocation3], 4294966848 }
  0x30   :  { %1308 = dma.done.wait [#allocation6], 7296  }
  0x31   :  { %1309 = vsyncadd [#allocation6], 4294960000 }
  0x32   :  { %1310 = dma.done.wait [#allocation9], 1024  }
  0x33   :  { %1311 = vsyncadd [#allocation9], 4294966272  ;;  %v1134_v0 = vld [vmem:[#allocation5 + $0x78] sm:$0xff]   ;;  %v1138_v4 = vld [vmem:[#allocation5 + $0x70] sm:$0xff]   ;;  %v1320_v43 = vmov 0.0   ;;  %vm1321_vm0 = vmmov 0  }
  0x34   :  { %v1135_v1 = vld [vmem:[#allocation5 + $0x38] sm:$0xff]   ;;  %993 = vmatprep.subr.bf16.mxu0 %v1134_v0  ;;  %v1139_v5 = vld [vmem:[#allocation5 + $0x30] sm:$0xff]   ;;  %v1142_v8 = vld [vmem:[#allocation5 + $0x68] sm:$0xff]   ;;  %vm508_vm1 = vcmask 130048   ;;  %s1322_s24 = smov [#allocation10]  }
  0x35   :  { %v1136_v2 = vld [vmem:[#allocation5 + $0xf8] sm:$0xff]   ;;  %994 = vmatpush3.bf16.msra.mxu0 %v1135_v1  ;;  %v1140_v6 = vld [vmem:[#allocation5 + $0xf0] sm:$0xff]   ;;  %v1143_v9 = vld [vmem:[#allocation5 + $0x28] sm:$0xff]   ;;  %s906_s25 = sshll.u32 %s1322_s24, 4  ;;  %s907_s25 = int_to_ptr.vmem [resolvable:$true] %s906_s25 }
  0x36   :  { %v1137_v3 = vld [vmem:[#allocation5 + $0xb8] sm:$0xff]   ;;  %1015 = vmatprep.subr.bf16.mxu1 %v1136_v2  ;;  %995 = vmatprep.subr.bf16.mxu0 %v1138_v4  ;;  %v1141_v7 = vld [vmem:[#allocation5 + $0xb0] sm:$0xff]   ;;  %v1144_v10 = vld [vmem:[#allocation5 + $0xe8] sm:$0xff]   ;;  %p1291_p7 = scmp.lt.s32.totalorder %s907_s25, %s907_s25 }
  0x37   :  { %1016 = vmatpush3.bf16.msra.mxu1 %v1137_v3  ;;  %v1145_v11 = vld [vmem:[#allocation5 + $0xa8] sm:$0xff]   ;;  %v1146_v12 = vld [vmem:[#allocation5 + $0x60] sm:$0xff]   ;;  %v1150_v16 = vld [vmem:[#allocation5 + $0x58] sm:$0xff]  }
  0x38   :  { %1017 = vmatprep.subr.bf16.mxu1 %v1140_v6  ;;  %v1147_v13 = vld [vmem:[#allocation5 + $0x20] sm:$0xff]   ;;  %v1151_v17 = vld [vmem:[#allocation5 + $0x18] sm:$0xff]   ;;  %v1154_v20 = vld [vmem:[#allocation5 + $0x50] sm:$0xff]  }
  0x39   :  { %996 = vmatpush3.bf16.msra.mxu0 %v1139_v5  ;;  %v1148_v14 = vld [vmem:[#allocation5 + $0xe0] sm:$0xff]   ;;  %v1152_v18 = vld [vmem:[#allocation5 + $0xd8] sm:$0xff]   ;;  %v1155_v21 = vld [vmem:[#allocation5 + $0x10] sm:$0xff]  }
  0x3a   :  { %997 = vmatprep.subr.bf16.mxu0 %v1142_v8  ;;  %v1149_v15 = vld [vmem:[#allocation5 + $0xa0] sm:$0xff]   ;;  %v1153_v19 = vld [vmem:[#allocation5 + $0x98] sm:$0xff]   ;;  %v1156_v22 = vld [vmem:[#allocation5 + $0xd0] sm:$0xff]  }
  0x3b   :  { %1018 = vmatpush3.bf16.msra.mxu1 %v1141_v7  ;;  %v1157_v23 = vld [vmem:[#allocation5 + $0x90] sm:$0xff]   ;;  %v1158_v24 = vld [vmem:[#allocation5 + $0x48] sm:$0xff]   ;;  %v1162_v28 = vld [vmem:[#allocation5 + $0x40] sm:$0xff]  }
  0x3c   :  { %1019 = vmatprep.subr.bf16.mxu1 %v1144_v10  ;;  %v1159_v25 = vld [vmem:[#allocation5 + $0x8] sm:$0xff]   ;;  %v1163_v29 = vld [vmem:[#allocation5] sm:$0xff]   ;;  %v1168_v35 = vld [vmem:[#allocation5 + $0x178] sm:$0xff]  }
  0x3d   :  { %998 = vmatpush3.bf16.msra.mxu0 %v1143_v9  ;;  %v1160_v26 = vld [vmem:[#allocation5 + $0xc8] sm:$0xff]   ;;  %v1164_v30 = vld [vmem:[#allocation5 + $0xc0] sm:$0xff]   ;;  %v1171_v39 = vld [vmem:[#allocation5 + $0x138] sm:$0xff]  }
  0x3e   :  { %999 = vmatprep.subr.bf16.mxu0 %v1146_v12  ;;  %v1161_v27 = vld [vmem:[#allocation5 + $0x88] sm:$0xff]   ;;  %v1167_v34 = vld [vmem:[#allocation5 + $0x80] sm:$0xff]   ;;  %v1172_v40 = vld [vmem:[#allocation5 + $0x170] sm:$0xff]  }
  0x3f   :  { %1020 = vmatpush3.bf16.msra.mxu1 %v1145_v11  ;;  %v81_v31 = vld [vmem:[#allocation2] sm:$0xff]  ;;  %v82_v36 = vld [vmem:[#allocation2 + $0x8] sm:$0xff]  ;;  %v1178_v47 = vld [vmem:[#allocation5 + $0x158] sm:$0xff]  }
  0x40   :  { %1021 = vmatprep.subr.bf16.mxu1 %v1148_v14  ;;  %v918_v32 = vcombine.low %v81_v31, %v81_v31  ;;  %v919_v33 = vcombine.high %v81_v31, %v81_v31  ;;  %v920_v37 = vcombine.low %v82_v36, %v82_v36  ;;  %v921_v38 = vcombine.high %v82_v36, %v82_v36  ;;  %v1173_v41 = vld [vmem:[#allocation5 + $0x130] sm:$0xff]   ;;  %v1174_v42 = vld [vmem:[#allocation5 + $0x168] sm:$0xff]   ;;  %v1176_v45 = vld [vmem:[#allocation5 + $0x160] sm:$0xff]  }
  0x41   :  { %1000 = vmatpush3.bf16.msra.mxu0 %v1147_v13  ;;  %v1175_v44 = vld [vmem:[#allocation5 + $0x128] sm:$0xff]   ;;  %v1177_v46 = vld [vmem:[#allocation5 + $0x120] sm:$0xff]   ;;  %v1179_v48 = vld [vmem:[#allocation5 + $0x118] sm:$0xff]  }
  0x42   :  { %1001 = vmatprep.subr.bf16.mxu0 %v1150_v16  ;;  %544 = vmatprep.mubr.bf16.mxu0 %v919_v33  ;;  %v1180_v49 = vld [vmem:[#allocation5 + $0x150] sm:$0xff]   ;;  %v1186_v50 = vld [vmem:[#allocation5 + $0x180] sm:$0xff]   ;;  %v1189_v54 = vld [vmem:[#allocation2 + $0x18] ss:$0 sps:$4 sm:$0xff]  }
  0x43   :  { %1022 = vmatpush3.bf16.msra.mxu1 %v1149_v15  ;;  %584 = vmatprep.mubr.bf16.mxu1 %v921_v38  ;;  %v83_v51 = vld [vmem:[#allocation2 + $0x10] sm:$0xff]  ;;  %v1182_v55 = vld [vmem:[#allocation5 + $0x148] sm:$0xff]   ;;  %v1184_v57 = vld [vmem:[#allocation5 + $0x140] sm:$0xff]  }
  0x44   :  { %1023 = vmatprep.subr.bf16.mxu1 %v1152_v18  ;;  %v1181_v52 = vld [vmem:[#allocation5 + $0x110] sm:$0xff]   ;;  %v923_v53 = vcombine.high %v83_v51, %v83_v51  ;;  %v1183_v56 = vld [vmem:[#allocation5 + $0x108] sm:$0xff]   ;;  %v1185_v58 = vld [vmem:[#allocation5 + $0x100] sm:$0xff]   ;;  %v922_v59 = vcombine.low %v83_v51, %v83_v51 }
  0x45   :  { %1002 = vmatpush3.bf16.msra.mxu0 %v1151_v17  ;;  %v1190_v60 = vld [vmem:[#allocation7 + $0x38] sm:$0xff]   ;;  %v1191_v61 = vld [vmem:[#allocation7 + $0x30] sm:$0xff]   ;;  %v1192_v62 = vld [vmem:[#allocation7 + $0x28] sm:$0xff]  }
  0x46   :  { %1003 = vmatprep.subr.bf16.mxu0 %v1154_v20  ;;  %v1193_v63 = vld [vmem:[#allocation7 + $0x20] sm:$0xff]   ;;  %v1194_v0 = vld [vmem:[#allocation7 + $0x18] sm:$0xff]   ;;  %v1195_v1 = vld [vmem:[#allocation7 + $0x10] sm:$0xff]  }
  0x47   :  { %1024 = vmatpush3.bf16.msra.mxu1 %v1153_v19  ;;  %v1196_v2 = vld [vmem:[#allocation7 + $0x8] sm:$0xff]   ;;  %v1197_v3 = vld [vmem:[#allocation7] sm:$0xff]   ;;  %v1198_v4 = vld [vmem:[#allocation8 + $0x38] sm:$0xff]  }
  0x48   :  { %1025 = vmatprep.subr.bf16.mxu1 %v1156_v22  ;;  %v1199_v5 = vld [vmem:[#allocation8 + $0x30] sm:$0xff]   ;;  %v1200_v6 = vld [vmem:[#allocation8 + $0x28] sm:$0xff]   ;;  %v1201_v7 = vld [vmem:[#allocation8 + $0x20] sm:$0xff]  }
  0x49   :  { %1004 = vmatpush3.bf16.msra.mxu0 %v1155_v21  ;;  %v1202_v8 = vld [vmem:[#allocation8 + $0x18] sm:$0xff]   ;;  %v1203_v9 = vld [vmem:[#allocation8 + $0x10] sm:$0xff]   ;;  %v1204_v36 = vld [vmem:[#allocation8 + $0x8] sm:$0xff]  }
  0x4a   :  { %1005 = vmatprep.subr.bf16.mxu0 %v1158_v24  ;;  %v975_v38 = vld [vmem:[%s1423_s4] ss:$0 sm:$0xff]  ;;  %s1286_s4 = scalar_lea.vmem %s907_s25, 64 }
  0x4b   :  { %1026 = vmatpush3.bf16.msra.mxu1 %v1157_v23  ;;  %v917_v23 = vld [vmem:[%s1421_s2] ss:$0 sm:$0xff]  ;;  %p1287_p6 = scmp.ne.s32.totalorder %s907_s25, %s1286_s4  ;;  %p1292_p8 = scmp.lt.s32.totalorder %s1286_s4, %s1286_s4 }
  0x4c   :  { %1027 = vmatprep.subr.bf16.mxu1 %v1160_v26 }
  0x4d   :  { %1006 = vmatpush3.bf16.msra.mxu0 %v1159_v25  ;;  %p1293_p9 = por %p1292_p8, %p1291_p7 }
  0x4e   :  { %1007 = vmatprep.subr.bf16.mxu0 %v1162_v28 }
  0x4f   :  { %1028 = vmatpush3.bf16.msra.mxu1 %v1161_v27  ;;  %p1294_p10 = pnand %p1293_p9, %p1287_p6 }
  0x50   :  { %1029 = vmatprep.subr.bf16.mxu1 %v1164_v30 }
  0x51   :  { %1008 = vmatpush3.bf16.msra.mxu0 %v1163_v29 }
  0x52   :  { %1037 = vmatprep.subr.bf16.mxu0 %v1168_v35 }
  0x53   :  { %1030 = vmatpush3.bf16.msra.mxu1 %v1167_v34 }
  0x54   :  { %545 = vmatmul.mubr.bf16.vlgmr.msra.gmra.mxu0 %v918_v32  ;;  %1079 = vmatprep.subr.bf16.mxu1 %v1320_v43 }
  0x55   :  { %1038 = vmatpush3.bf16.msra.mxu0 %v1171_v39  ;;  %624 = vmatprep.mubr.bf16.mxu0 %v923_v53 }
  0x56   :  { %585 = vmatmul.mubr.bf16.vlgmr.msra.gmra.mxu1 %v920_v37  ;;  %1039 = vmatprep.subr.bf16.mxu0 %v1172_v40  ;;  %v1205_v37 = vld [vmem:[#allocation8] sm:$0xff]  }
  0x57   :  { %1081 = vmatprep.mubr.msk.bf16.mxu1 %vm1321_vm0, %v1320_v43  ;;  %1080 = vmatpush3.bf16.msra.mxu1 %v1186_v50 }
  0x58   :  { %1085 = vmatprep.subr.bf16.mxu1 %v1320_v43 }
  0x59   :  { %1040 = vmatpush3.bf16.msra.mxu0 %v1173_v41 }
  0x5a   :  { %1041 = vmatprep.subr.bf16.mxu0 %v1174_v42 }
  0x5d   :  { %1042 = vmatpush3.bf16.msra.mxu0 %v1175_v44 }
  0x5e   :  { %1043 = vmatprep.subr.bf16.mxu0 %v1176_v45  ;;  %1082 = vmatmul.mubr.msk.bf16.vlgmr.msra.gmra.mxu1 %vm508_vm1, %v1189_v54 }
  0x5f   :  { %1101 = vmatprep.mubr.msk.bf16.mxu1 %vm1321_vm0, %v1320_v43  ;;  %1086 = vmatpush3.bf16.msra.mxu1 %v1190_v60 }
  0x60   :  { %1087 = vmatprep.subr.bf16.mxu1 %v1320_v43 }
  0x61   :  { %1044 = vmatpush3.bf16.msra.mxu0 %v1177_v46 }
  0x62   :  { %1045 = vmatprep.subr.bf16.mxu0 %v1178_v47  ;;  %v984_v47 = vld [vmem:[%s1425_s6] ss:$0 sm:$0xff] }
  0x63   :  { %1088 = vmatpush3.bf16.msra.mxu1 %v1191_v61 }
  0x64   :  { %1089 = vmatprep.subr.bf16.mxu1 %v1320_v43 }
  0x65   :  { %1046 = vmatpush3.bf16.msra.mxu0 %v1179_v48 }
  0x66   :  { %1047 = vmatprep.subr.bf16.mxu0 %v1180_v49 }
  0x67   :  { %1090 = vmatpush3.bf16.msra.mxu1 %v1192_v62 }
  0x68   :  { %1091 = vmatprep.subr.bf16.mxu1 %v1320_v43 }
  0x69   :  { %1048 = vmatpush3.bf16.msra.mxu0 %v1181_v52 }
  0x6a   :  { %1049 = vmatprep.subr.bf16.mxu0 %v1182_v55 }
  0x6b   :  { %1092 = vmatpush3.bf16.msra.mxu1 %v1193_v63 }
  0x6c   :  { %1093 = vmatprep.subr.bf16.mxu1 %v1320_v43 }
  0x6d   :  { %1050 = vmatpush3.bf16.msra.mxu0 %v1183_v56 }
  0x6e   :  { %1051 = vmatprep.subr.bf16.mxu0 %v1184_v57 }
  0x6f   :  { %1094 = vmatpush3.bf16.msra.mxu1 %v1194_v0 }
  0x70   :  { %1095 = vmatprep.subr.bf16.mxu1 %v1320_v43 }
  0x71   :  { %1052 = vmatpush3.bf16.msra.mxu0 %v1185_v58 }
  0x72   :  { %1105 = vmatprep.subr.bf16.mxu0 %v1320_v43 }
  0x73   :  { %1096 = vmatpush3.bf16.msra.mxu1 %v1195_v1 }
  0x74   :  { %625 = vmatmul.mubr.bf16.vlgmr.msra.gmra.mxu0 %v922_v59  ;;  %1097 = vmatprep.subr.bf16.mxu1 %v1320_v43 }
  0x75   :  { %1121 = vmatprep.mubr.msk.bf16.mxu0 %vm1321_vm0, %v1320_v43  ;;  %1106 = vmatpush3.bf16.msra.mxu0 %v1198_v4 }
  0x76   :  { %1107 = vmatprep.subr.bf16.mxu0 %v1320_v43 }
  0x77   :  { %1098 = vmatpush3.bf16.msra.mxu1 %v1196_v2 }
  0x78   :  { %1099 = vmatprep.subr.bf16.mxu1 %v1320_v43 }
  0x79   :  { %1108 = vmatpush3.bf16.msra.mxu0 %v1199_v5 }
  0x7a   :  { %1109 = vmatprep.subr.bf16.mxu0 %v1320_v43 }
  0x7b   :  { %1100 = vmatpush3.bf16.msra.mxu1 %v1197_v3 }
  0x7d   :  { %1110 = vmatpush3.bf16.msra.mxu0 %v1200_v6 }
  0x7e   :  { %1111 = vmatprep.subr.bf16.mxu0 %v1320_v43 }
  0x81   :  { %1112 = vmatpush3.bf16.msra.mxu0 %v1201_v7 }
  0x82   :  { %1113 = vmatprep.subr.bf16.mxu0 %v1320_v43 }
  0x85   :  { %1114 = vmatpush3.bf16.msra.mxu0 %v1202_v8 }
  0x86   :  { %1115 = vmatprep.subr.bf16.mxu0 %v1320_v43 }
  0x89   :  { %1116 = vmatpush3.bf16.msra.mxu0 %v1203_v9 }
  0x8a   :  { %1117 = vmatprep.subr.bf16.mxu0 %v1320_v43 }
  0x8d   :  { %1118 = vmatpush3.bf16.msra.mxu0 %v1204_v36 }
  0x8e   :  { %1119 = vmatprep.subr.bf16.mxu0 %v1320_v43 }
  0x91   :  { %1120 = vmatpush3.bf16.msra.mxu0 %v1205_v37 }
 0x114   :  { %v1009_v10 = vpop.f32.mrf.mxu0 }
 0x116   :  { %v1010_v11 = vpop.f32.mrf.mxu0  ;;  %v1031_v12 = vpop.f32.mrf.mxu1 }
 0x117   :  { %v1011_v22 = vadd.f32 %v1010_v11, %v1009_v10 }
 0x118   :  { %v1012_v13 = vpop.f32.mrf.mxu0  ;;  %v1032_v14 = vpop.f32.mrf.mxu1 }
 0x119   :  { %v547_v24 = vadd.f32 %v1011_v22, %v917_v23  ;;  %v1033_v25 = vadd.f32 %v1032_v14, %v1031_v12 }
 0x11a   :  { %v1013_v15 = vpop.f32.mrf.mxu0  ;;  %v1034_v16 = vpop.f32.mrf.mxu1 }
 0x11b   :  { %v587_v28 = vadd.f32 %v1033_v25, %v547_v24 }
 0x11c   :  { %v1035_v17 = vpop.f32.mrf.mxu1 }
 0x11e   :  { %v666_v18 = vpop.f32.mrf.mxu1 }
 0x120   :  { %v1083_v19 = vpop.f32.mrf.mxu1 }
 0x122   :  { %v669_v20 = vpop.f32.mrf.mxu1 }
 0x124   :  { %v1084_v21 = vpop.f32.mrf.mxu1 }
 0x134   :  { %v1053_v26 = vpop.f32.mrf.mxu0 }
 0x136   :  { %v1054_v27 = vpop.f32.mrf.mxu0 }
 0x137   :  { %v1055_v29 = vadd.f32 %v1054_v27, %v1053_v26 }
 0x138   :  { %v1056_v30 = vpop.f32.mrf.mxu0 }
 0x139   :  { %v627_v31 = vadd.f32 %v1055_v29, %v587_v28 }
 0x13a   :  { %v1057_v32 = vpop.f32.mrf.mxu0 }
 0x13b   :  { %v667_v33 = vadd.f32 %v666_v18, %v627_v31 }
 0x13d   :  { %v672_v34 = vmax.f32 %v667_v33, 0.0 }
 0x13f   :  { %v673_v35 = vpack.c.bf16 %v672_v34, %v672_v34 }
 0x141   :  { %1102 = vmatmul.mubr.bf16.vlgmr.msra.gmra.mxu1 %v673_v35 }
 0x201   :  { %v779_v39 = vpop.f32.mrf.mxu1 }
 0x202   :  { %v780_v40 = vadd.f32 %v975_v38, %v779_v39 }
 0x203   :  { %v1103_v41 = vpop.f32.mrf.mxu1 }
 0x204   :  { %v785_v42 = vmax.f32 %v780_v40, 0.0 }
 0x205   :  { %v782_v44 = vpop.f32.mrf.mxu1 }
 0x206   :  { %v786_v45 = vpack.c.bf16 %v785_v42, %v785_v42 }
 0x207   :  { %v1104_v46 = vpop.f32.mrf.mxu1 }
 0x208   :  { %1122 = vmatmul.mubr.bf16.vlgmr.msra.gmra.mxu0 %v786_v45 }
 0x2c8   :  { %v892_v48 = vpop.f32.mrf.mxu0 }
 0x2c9   :  { %v893_v43 = vadd.f32 %v984_v47, %v892_v48 }
 0x2ca   :  { %v1123_v49 = vpop.f32.mrf.mxu0 }
 0x2cb   :  { %v898_v50 = vpack.c.bf16 %v893_v43, %v893_v43 }
 0x2cc   :  { %v895_v51 = vpop.f32.mrf.mxu0 }
 0x2cd   :  { %899 = vst [vmem:[#allocation10] sm:$0xf] %v898_v50 }
 0x2ce   :  { %v1124_v52 = vpop.f32.mrf.mxu0 }
 0x2cf   :  { %1297 = shalt.err (!%p1294_p10)
}
 0x2d0   :  { %909 = dma.vmem_to_hbm [thread:$0]  %s907_s25, 64, %s1426_s7, [#allocation4]  }
 0x2d1   :  { %1312 = dma.done.wait [#allocation4], 64  }
 0x2d2   :  { %1313 = vsyncadd [#allocation4], 4294967232 }
 0x2d3   :  { %913 = vsyncpa [#allocation3], 1 }
 0x2d4   :  { %914 = vsyncpa [#allocation6], 1 }
 0x2d5   :  { %915 = vsyncpa [#allocation9], 1 }
 0x2d6   :  { %916 = vsyncpa [#allocation4], 1 }

</bundles_post_ra>
